<compile_context>
chip_gen: v7x
topology: tpu7x:2x2x1
jax: 0.10.0
libtpu: 0.0.40
codegen_flags: <defaults>
</compile_context>

<pallas_src>
import math

import jax
import jax.numpy as jnp
from jax import lax
from jax.experimental import pallas as pl
from jax.experimental.pallas import tpu as pltpu

# ---------------- model configuration (small, structure-faithful) ----------------
B = 2                       # batch
TIME_SPAN = 3               # ctor default time_span
T = 3                       # total sequence dim; T % TIME_SPAN == 0 (chunk size 1)
N_TOK = 32                  # tokens per frame chunk
P_TOK = 16                  # per-token dim "P"; must be a perfect square
HS = WS = int(math.isqrt(P_TOK))            # 4 x 4 spatial grid after .view
EMBED = (T // TIME_SPAN) * N_TOK            # 32 (required by frame.view(B, embed, hs, ws))
PATCH = 4                   # patch_size (ConvTranspose2d kernel == stride)
OUT_CHANS = 3
COUT = OUT_CHANS // TIME_SPAN               # conv_output_channel = 1
H_OUT = HS * PATCH                          # 16
W_OUT = WS * PATCH                          # 16

ROWS = B * TIME_SPAN                        # 6 fused matmul rows: (b, t)
K_IN = EMBED * HS * WS                      # 512 contraction: (c, i, j)
LANES = COUT * H_OUT * W_OUT                # 256 lanes: (co, i, di, j, dj)

FLOPS = 2 * ROWS * K_IN * LANES
BYTES = 4 * (ROWS * K_IN + K_IN * LANES + COUT + ROWS * LANES)

assert T % TIME_SPAN == 0
assert COUT == 1, "SMEM-scalar bias path assumes conv_output_channel == 1"
# NOTE: for COUT > 1 the bias would become a [1, LANES] VMEM row folded into the epilogue.


# --------------------------------- kernel ----------------------------------------
def deproj_kernel(x_ref, w_ref, b_ref, o_ref):
    # x_ref: [ROWS, K_IN]  VMEM   w_ref: [K_IN, LANES] VMEM   b_ref: [1] SMEM scalar
    # o_ref: [ROWS, LANES] VMEM  -- lane-dense final layout (unmasked full-lane stores).
    # One MXU contraction covers every batch element, every time frame and every
    # spatial site; the ConvTranspose2d pixel-shuffle is folded into w_ref, so no
    # in-kernel or wrapper-side transposes/relayouts are needed.
    o_ref[...] = (
        jnp.dot(x_ref[...], w_ref[...], preferred_element_type=jnp.float32)
        + b_ref[0]
    )


def run_deproj(x2, wbig, bias):
    # Single invocation, no grid: whole-array VMEM operands (~0.55 MB total), one
    # launch, zero per-grid-step overhead.  cost_estimate keeps XLA from scheduling
    # conservatively around the opaque custom call.
    return pl.pallas_call(
        deproj_kernel,
        out_shape=jax.ShapeDtypeStruct((ROWS, LANES), jnp.float32),
        in_specs=[
            pl.BlockSpec(memory_space=pltpu.MemorySpace.VMEM),   # x2
            pl.BlockSpec(memory_space=pltpu.MemorySpace.VMEM),   # wbig
            pl.BlockSpec(memory_space=pltpu.MemorySpace.SMEM),   # bias scalar
        ],
        out_specs=pl.BlockSpec(memory_space=pltpu.MemorySpace.VMEM),
        cost_estimate=pl.CostEstimate(
            flops=FLOPS, transcendentals=0, bytes_accessed=BYTES
        ),
    )(x2, wbig, bias)


# ------------------------------ params & forward ----------------------------------
def init_params(key):
    # nn.ConvTranspose2d(embed_dim, COUT, kernel=stride=PATCH):
    #   weight [in=EMBED, out=COUT, PATCH, PATCH], xavier_uniform_; bias zeros.
    fan_in = COUT * PATCH * PATCH
    fan_out = EMBED * PATCH * PATCH
    limit = math.sqrt(6.0 / (fan_in + fan_out))
    w = jax.random.uniform(key, (EMBED, COUT, PATCH, PATCH), jnp.float32, -limit, limit)
    b = jnp.zeros((COUT,), jnp.float32)
    return {"w": w, "b": b}


def prepare_params(params):
    # One-time weight folding (done OUTSIDE the jitted forward): fold the
    # de-patchify permutation into the ConvTranspose2d weight.
    #   Wbig[(c,i,j), (co,i',di,j',dj)] = W[c,co,di,dj] * (i==i') * (j==j')
    w = params["w"]                                             # [EMBED, COUT, P, P]
    eye = jnp.eye(HS * WS, dtype=w.dtype).reshape(HS, WS, HS, WS)   # [i, j, i', j']
    wbig = jnp.einsum("codf,ijkl->cijokdlf", w, eye)            # c,i,j, co,i',di,j',dj
    wbig = wbig.reshape(K_IN, LANES)                            # [512, 256]
    return {"wbig": wbig, "b": params["b"]}


def forward(prepared, x):
    # x: [B, T, N, P]
    b_dim, t_dim, n_dim, p_dim = x.shape
    assert t_dim % TIME_SPAN == 0
    # torch.split(dim=1) with consecutive-T chunks + .view(B, EMBED, hs, ws) is a
    # pure row-major regrouping, so folding (b, t) into rows and (c, i, j) into the
    # contraction axis is a FREE contiguous reshape (no transpose HLO).
    x2 = x.reshape(b_dim * TIME_SPAN, (t_dim // TIME_SPAN) * n_dim * p_dim)  # [6, 512]

    # --- Pallas hot path: one fused kernel, one launch ---
    y = run_deproj(x2, prepared["wbig"], prepared["b"])          # [6, 256] lane-dense

    # Free contiguous view: rows=(b,t), lanes=(co,i,di,j,dj) -> [B, T_span*COUT, H, W]
    return y.reshape(b_dim, TIME_SPAN * COUT, H_OUT, W_OUT)


def reference(params, x):
    # Pure-JAX reference of the PyTorch forward (for correctness check).
    b_dim = x.shape[0]
    frames = x.reshape(b_dim, TIME_SPAN, EMBED, HS, WS)
    out = jnp.einsum(
        "btcij,cofg->btoifjg", frames, params["w"], precision=lax.Precision.HIGHEST
    )
    out = out + params["b"][None, None, :, None, None, None, None]
    return out.reshape(b_dim, TIME_SPAN * COUT, H_OUT, W_OUT)


if __name__ == "__main__":
    key = jax.random.PRNGKey(0)
    pkey, xkey = jax.random.split(key)
    params = init_params(pkey)
    x = jax.random.normal(xkey, (B, T, N_TOK, P_TOK), dtype=jnp.float32)

    prepared = prepare_params(params)          # one-time weight folding, off the hot path

    out = jax.jit(forward)(prepared, x)
    out = jax.block_until_ready(out)

    assert out.shape == (B, TIME_SPAN * COUT, H_OUT, W_OUT), out.shape
    assert bool(jnp.all(jnp.isfinite(out)))

    ref = reference(params, x)
    max_err = float(jnp.max(jnp.abs(out - ref)))
    assert bool(jnp.allclose(out, ref, atol=2e-3, rtol=2e-3)), max_err
    print("KERNEL_OK")
</pallas_src>

<mosaic_0001>
module attributes {stable_mosaic.version = 11 : i64} {
  func.func @deproj_kernel(%arg0: memref<6x512xf32, #tpu.memory_space<vmem>>, %arg1: memref<512x256xf32, #tpu.memory_space<vmem>>, %arg2: memref<1xf32, #tpu.memory_space<smem>>, %arg3: memref<6x256xf32, #tpu.memory_space<vmem>>) attributes {dimension_semantics = [], scalar_prefetch = 0 : i64, scratch_operands = 0 : i64, tpu.core_type = #tpu.core_type<tc>} {
    %c0 = arith.constant 0 : index
    %c0_0 = arith.constant 0 : index
    %0 = vector.load %arg0[%c0, %c0_0] : memref<6x512xf32, #tpu.memory_space<vmem>>, vector<6x512xf32>
    %c0_1 = arith.constant 0 : index
    %c0_2 = arith.constant 0 : index
    %1 = vector.load %arg1[%c0_1, %c0_2] : memref<512x256xf32, #tpu.memory_space<vmem>>, vector<512x256xf32>
    %cst = arith.constant dense<0.000000e+00> : vector<6x256xf32>
    %2 = tpu.matmul %0, %1, %cst {dimension_numbers = #tpu.dot_dimension_numbers<[1], [0], [0], [1], [0, 0, 1, 1], [], []>} : vector<6x512xf32>, vector<512x256xf32>, vector<6x256xf32> -> vector<6x256xf32>
    %c0_3 = arith.constant 0 : index
    %3 = memref.load %arg2[%c0_3] : memref<1xf32, #tpu.memory_space<smem>>
    %4 = vector.broadcast %3 : f32 to vector<6x256xf32>
    %5 = arith.addf %2, %4 : vector<6x256xf32>
    %c0_4 = arith.constant 0 : index
    %c0_5 = arith.constant 0 : index
    %6 = vector.load %arg3[%c0_4, %c0_5] : memref<6x256xf32, #tpu.memory_space<vmem>>, vector<6x256xf32>
    tpu.vector_store %arg3[%c0_4, %c0_5], %5 {strides = array<i32>} : memref<6x256xf32, #tpu.memory_space<vmem>>, vector<6x256xf32>,
    return
  }
}

</mosaic_0001>

<bundles_post_ra>
// kernel: forward.1
= control target key start
LH: loop header
LB: loop body
LE: loop exit
PB: predicated region body
PF: predicated region fallthrough
CT: control target
= control target key end

     0   :  { %9 = vsyncpa [#allocation4], 0  ;;  %s471_s12 = smov [#allocation3]   ;;  %s527_s0 = inlined_call_operand.vmem [shape: f32[6,512], index: 0, kind: input, shape index: {}]   ;;  %s528_s1 = inlined_call_operand.hbm [shape: f32[512,256], index: 1, kind: input, shape index: {}]   ;;  %s529_s2 = inlined_call_operand.<no memory space> [shape: f32[1], index: 2, kind: input, shape index: {}]   ;;  %s530_s3 = inlined_call_operand.vmem [shape: f32[6,256], index: 3, kind: output, shape index: {}]  }
   0x1   :  { %s17_s13 = sshll.u32 %s471_s12, 4  ;;  %s447_s16 = scalar_lea.hbm %s528_s1, 16384  ;;  %s18_s13 = int_to_ptr.vmem [resolvable:$true] %s17_s13 }
   0x2   :  { %p448_p0 = scmp.ne.s32.totalorder %s528_s1, %s447_s16  ;;  %p451_p1 = scmp.lt.u32.totalorder %s447_s16, %s528_s1 }
   0x4   :  { %p453_p2 = pnand %p451_p1, %p448_p0 }
   0x6   :  { %456 = shalt.err (!%p453_p2)
}
   0x7   :  { %s457_s21 = scalar_lea.vmem %s18_s13, 16384  ;;  %p462_p4 = scmp.lt.s32.totalorder %s18_s13, %s18_s13 }
   0x8   :  { %p458_p3 = scmp.ne.s32.totalorder %s18_s13, %s457_s21  ;;  %p463_p5 = scmp.lt.s32.totalorder %s457_s21, %s457_s21 }
   0xa   :  { %p464_p6 = por %p463_p5, %p462_p4 }
   0xc   :  { %p465_p7 = pnand %p464_p6, %p458_p3 }
   0xe   :  { %468 = shalt.err (!%p465_p7)
}
   0xf   :  { %s472_s22 = smov 256   ;;  %s473_s23 = smov 16  }
  0x10   :  { %23 = dma.hbm_to_vmem [thread:$0]  %s528_s1, 16384, %s18_s13, [#allocation4], %s472_s22, %s472_s22, %s473_s23  }
  0x11   :  { %469 = dma.done.wait [#allocation4], 16384  }
  0x12   :  { %470 = vsyncadd [#allocation4], 4294950912  ;;  %v34_v0 = vld [vmem:[#allocation3 + $0x8] sm:$0xff]  ;;  %v36_v1 = vld [vmem:[#allocation3 + $0x18] sm:$0xff] }
  0x13   :  { %v33_v2 = vld [vmem:[#allocation3] sm:$0xff]  ;;  %v312_v3 = vpack.c.bf16 %v36_v1, %v34_v0  ;;  %v35_v4 = vld [vmem:[#allocation3 + $0x10] sm:$0xff]  ;;  %v98_v5 = vld [vmem:[#allocation3 + $0x208] sm:$0xff] }
  0x14   :  { %v100_v6 = vld [vmem:[#allocation3 + $0x218] sm:$0xff]  ;;  %v314_v7 = vpack.c.bf16 %v35_v4, %v33_v2  ;;  %v97_v9 = vld [vmem:[#allocation3 + $0x200] sm:$0xff]  ;;  %v99_v10 = vld [vmem:[#allocation3 + $0x210] sm:$0xff] }
  0x15   :  { %v376_v8 = vpack.c.bf16 %v100_v6, %v98_v5  ;;  %v38_v11 = vld [vmem:[#allocation3 + $0x28] sm:$0xff]  ;;  %313 = vmatprep.subr.bf16.mxu1 %v312_v3  ;;  %v378_v12 = vpack.c.bf16 %v99_v10, %v97_v9  ;;  %v40_v13 = vld [vmem:[#allocation3 + $0x38] sm:$0xff]  ;;  %v37_v14 = vld [vmem:[#allocation3 + $0x20] sm:$0xff] }
  0x16   :  { %v39_v15 = vld [vmem:[#allocation3 + $0x30] sm:$0xff]  ;;  %315 = vmatpush1.bf16.msra.mxu1 %v314_v7  ;;  %v316_v16 = vpack.c.bf16 %v40_v13, %v38_v11  ;;  %v102_v18 = vld [vmem:[#allocation3 + $0x228] sm:$0xff]  ;;  %v104_v19 = vld [vmem:[#allocation3 + $0x238] sm:$0xff] }
  0x17   :  { %377 = vmatprep.subr.bf16.mxu0 %v376_v8  ;;  %v318_v17 = vpack.c.bf16 %v39_v15, %v37_v14  ;;  %v101_v20 = vld [vmem:[#allocation3 + $0x220] sm:$0xff]  ;;  %v380_v21 = vpack.c.bf16 %v104_v19, %v102_v18  ;;  %v103_v22 = vld [vmem:[#allocation3 + $0x230] sm:$0xff]  ;;  %v42_v23 = vld [vmem:[#allocation3 + $0x48] sm:$0xff] }
  0x18   :  { %379 = vmatpush1.bf16.msra.mxu0 %v378_v12  ;;  %v44_v24 = vld [vmem:[#allocation3 + $0x58] sm:$0xff]  ;;  %317 = vmatprep.subr.bf16.mxu1 %v316_v16  ;;  %v382_v25 = vpack.c.bf16 %v103_v22, %v101_v20  ;;  %v41_v27 = vld [vmem:[#allocation3 + $0x40] sm:$0xff]  ;;  %v43_v28 = vld [vmem:[#allocation3 + $0x50] sm:$0xff] }
  0x19   :  { %v320_v26 = vpack.c.bf16 %v44_v24, %v42_v23  ;;  %v106_v29 = vld [vmem:[#allocation3 + $0x248] sm:$0xff]  ;;  %381 = vmatprep.subr.bf16.mxu0 %v380_v21  ;;  %v108_v30 = vld [vmem:[#allocation3 + $0x258] sm:$0xff]  ;;  %v105_v31 = vld [vmem:[#allocation3 + $0x240] sm:$0xff]  ;;  %v322_v33 = vpack.c.bf16 %v43_v28, %v41_v27 }
  0x1a   :  { %v107_v32 = vld [vmem:[#allocation3 + $0x250] sm:$0xff]  ;;  %319 = vmatpush1.bf16.msra.mxu1 %v318_v17  ;;  %v384_v34 = vpack.c.bf16 %v108_v30, %v106_v29  ;;  %v46_v35 = vld [vmem:[#allocation3 + $0x68] sm:$0xff]  ;;  %v48_v36 = vld [vmem:[#allocation3 + $0x78] sm:$0xff] }
  0x1b   :  { %v45_v37 = vld [vmem:[#allocation3 + $0x60] sm:$0xff]  ;;  %321 = vmatprep.subr.bf16.mxu1 %v320_v26  ;;  %v386_v38 = vpack.c.bf16 %v107_v32, %v105_v31  ;;  %v324_v39 = vpack.c.bf16 %v48_v36, %v46_v35  ;;  %v47_v40 = vld [vmem:[#allocation3 + $0x70] sm:$0xff]  ;;  %v110_v41 = vld [vmem:[#allocation3 + $0x268] sm:$0xff] }
  0x1c   :  { %383 = vmatpush1.bf16.msra.mxu0 %v382_v25  ;;  %v112_v42 = vld [vmem:[#allocation3 + $0x278] sm:$0xff]  ;;  %v109_v44 = vld [vmem:[#allocation3 + $0x260] sm:$0xff]  ;;  %v111_v45 = vld [vmem:[#allocation3 + $0x270] sm:$0xff]  ;;  %v326_v48 = vpack.c.bf16 %v47_v40, %v45_v37 }
  0x1d   :  { %385 = vmatprep.subr.bf16.mxu0 %v384_v34  ;;  %v388_v43 = vpack.c.bf16 %v112_v42, %v110_v41  ;;  %v50_v46 = vld [vmem:[#allocation3 + $0x88] sm:$0xff]  ;;  %v52_v47 = vld [vmem:[#allocation3 + $0x98] sm:$0xff]  ;;  %v390_v51 = vpack.c.bf16 %v111_v45, %v109_v44  ;;  %v49_v53 = vld [vmem:[#allocation3 + $0x80] sm:$0xff] }
  0x1e   :  { %323 = vmatpush1.bf16.msra.mxu1 %v322_v33  ;;  %v114_v49 = vld [vmem:[#allocation3 + $0x288] sm:$0xff]  ;;  %v116_v50 = vld [vmem:[#allocation3 + $0x298] sm:$0xff]  ;;  %v328_v52 = vpack.c.bf16 %v52_v47, %v50_v46  ;;  %v51_v54 = vld [vmem:[#allocation3 + $0x90] sm:$0xff] }
  0x1f   :  { %325 = vmatprep.subr.bf16.mxu1 %v324_v39  ;;  %v113_v55 = vld [vmem:[#allocation3 + $0x280] sm:$0xff]  ;;  %v392_v56 = vpack.c.bf16 %v116_v50, %v114_v49  ;;  %v115_v57 = vld [vmem:[#allocation3 + $0x290] sm:$0xff]  ;;  %v54_v58 = vld [vmem:[#allocation3 + $0xa8] sm:$0xff]  ;;  %v330_v62 = vpack.c.bf16 %v51_v54, %v49_v53 }
  0x20   :  { %387 = vmatpush1.bf16.msra.mxu0 %v386_v38  ;;  %v56_v59 = vld [vmem:[#allocation3 + $0xb8] sm:$0xff]  ;;  %v118_v60 = vld [vmem:[#allocation3 + $0x2a8] sm:$0xff]  ;;  %v394_v63 = vpack.c.bf16 %v115_v57, %v113_v55  ;;  %v53_v1 = vld [vmem:[#allocation3 + $0xa0] sm:$0xff] }
  0x21   :  { %389 = vmatprep.subr.bf16.mxu0 %v388_v43  ;;  %v120_v61 = vld [vmem:[#allocation3 + $0x2b8] sm:$0xff]  ;;  %v332_v0 = vpack.c.bf16 %v56_v59, %v54_v58  ;;  %v55_v2 = vld [vmem:[#allocation3 + $0xb0] sm:$0xff]  ;;  %v117_v3 = vld [vmem:[#allocation3 + $0x2a0] sm:$0xff] }
  0x22   :  { %327 = vmatpush1.bf16.msra.mxu1 %v326_v48  ;;  %v396_v4 = vpack.c.bf16 %v120_v61, %v118_v60  ;;  %v119_v5 = vld [vmem:[#allocation3 + $0x2b0] sm:$0xff]  ;;  %v58_v6 = vld [vmem:[#allocation3 + $0xc8] sm:$0xff]  ;;  %v60_v7 = vld [vmem:[#allocation3 + $0xd8] sm:$0xff]  ;;  %v334_v10 = vpack.c.bf16 %v55_v2, %v53_v1 }
  0x23   :  { %329 = vmatprep.subr.bf16.mxu1 %v328_v52  ;;  %v122_v8 = vld [vmem:[#allocation3 + $0x2c8] sm:$0xff]  ;;  %v124_v9 = vld [vmem:[#allocation3 + $0x2d8] sm:$0xff]  ;;  %v398_v11 = vpack.c.bf16 %v119_v5, %v117_v3  ;;  %v336_v12 = vpack.c.bf16 %v60_v7, %v58_v6  ;;  %v57_v13 = vld [vmem:[#allocation3 + $0xc0] sm:$0xff] }
  0x24   :  { %391 = vmatpush1.bf16.msra.mxu0 %v390_v51  ;;  %v59_v14 = vld [vmem:[#allocation3 + $0xd0] sm:$0xff]  ;;  %v121_v15 = vld [vmem:[#allocation3 + $0x2c0] sm:$0xff]  ;;  %v400_v16 = vpack.c.bf16 %v124_v9, %v122_v8  ;;  %v62_v18 = vld [vmem:[#allocation3 + $0xe8] sm:$0xff] }
  0x25   :  { %393 = vmatprep.subr.bf16.mxu0 %v392_v56  ;;  %v123_v17 = vld [vmem:[#allocation3 + $0x2d0] sm:$0xff]  ;;  %v64_v19 = vld [vmem:[#allocation3 + $0xf8] sm:$0xff]  ;;  %v126_v20 = vld [vmem:[#allocation3 + $0x2e8] sm:$0xff]  ;;  %v338_v22 = vpack.c.bf16 %v59_v14, %v57_v13 }
  0x26   :  { %331 = vmatpush1.bf16.msra.mxu1 %v330_v62  ;;  %v128_v21 = vld [vmem:[#allocation3 + $0x2f8] sm:$0xff]  ;;  %v402_v23 = vpack.c.bf16 %v123_v17, %v121_v15  ;;  %v340_v24 = vpack.c.bf16 %v64_v19, %v62_v18  ;;  %v61_v25 = vld [vmem:[#allocation3 + $0xe0] sm:$0xff]  ;;  %v63_v26 = vld [vmem:[#allocation3 + $0xf0] sm:$0xff] }
  0x27   :  { %333 = vmatprep.subr.bf16.mxu1 %v332_v0  ;;  %v125_v27 = vld [vmem:[#allocation3 + $0x2e0] sm:$0xff]  ;;  %v404_v28 = vpack.c.bf16 %v128_v21, %v126_v20  ;;  %v127_v29 = vld [vmem:[#allocation3 + $0x2f0] sm:$0xff]  ;;  %v66_v30 = vld [vmem:[#allocation3 + $0x108] sm:$0xff]  ;;  %v342_v34 = vpack.c.bf16 %v63_v26, %v61_v25 }
  0x28   :  { %395 = vmatpush1.bf16.msra.mxu0 %v394_v63  ;;  %v68_v31 = vld [vmem:[#allocation3 + $0x118] sm:$0xff]  ;;  %v130_v32 = vld [vmem:[#allocation3 + $0x308] sm:$0xff]  ;;  %v406_v35 = vpack.c.bf16 %v127_v29, %v125_v27  ;;  %v65_v37 = vld [vmem:[#allocation3 + $0x100] sm:$0xff] }
  0x29   :  { %397 = vmatprep.subr.bf16.mxu0 %v396_v4  ;;  %v132_v33 = vld [vmem:[#allocation3 + $0x318] sm:$0xff]  ;;  %v344_v36 = vpack.c.bf16 %v68_v31, %v66_v30  ;;  %v67_v38 = vld [vmem:[#allocation3 + $0x110] sm:$0xff]  ;;  %v129_v39 = vld [vmem:[#allocation3 + $0x300] sm:$0xff] }
  0x2a   :  { %335 = vmatpush1.bf16.msra.mxu1 %v334_v10  ;;  %v408_v40 = vpack.c.bf16 %v132_v33, %v130_v32  ;;  %v131_v41 = vld [vmem:[#allocation3 + $0x310] sm:$0xff]  ;;  %v70_v42 = vld [vmem:[#allocation3 + $0x128] sm:$0xff]  ;;  %v72_v43 = vld [vmem:[#allocation3 + $0x138] sm:$0xff]  ;;  %v346_v46 = vpack.c.bf16 %v67_v38, %v65_v37 }
  0x2b   :  { %337 = vmatprep.subr.bf16.mxu1 %v336_v12  ;;  %v134_v44 = vld [vmem:[#allocation3 + $0x328] sm:$0xff]  ;;  %v136_v45 = vld [vmem:[#allocation3 + $0x338] sm:$0xff]  ;;  %v410_v47 = vpack.c.bf16 %v131_v41, %v129_v39  ;;  %v348_v48 = vpack.c.bf16 %v72_v43, %v70_v42  ;;  %v69_v49 = vld [vmem:[#allocation3 + $0x120] sm:$0xff] }
  0x2c   :  { %399 = vmatpush1.bf16.msra.mxu0 %v398_v11  ;;  %v71_v50 = vld [vmem:[#allocation3 + $0x130] sm:$0xff]  ;;  %v133_v51 = vld [vmem:[#allocation3 + $0x320] sm:$0xff]  ;;  %v412_v52 = vpack.c.bf16 %v136_v45, %v134_v44  ;;  %v74_v54 = vld [vmem:[#allocation3 + $0x148] sm:$0xff] }
  0x2d   :  { %401 = vmatprep.subr.bf16.mxu0 %v400_v16  ;;  %v135_v53 = vld [vmem:[#allocation3 + $0x330] sm:$0xff]  ;;  %v76_v55 = vld [vmem:[#allocation3 + $0x158] sm:$0xff]  ;;  %v138_v56 = vld [vmem:[#allocation3 + $0x348] sm:$0xff]  ;;  %v350_v58 = vpack.c.bf16 %v71_v50, %v69_v49 }
  0x2e   :  { %339 = vmatpush1.bf16.msra.mxu1 %v338_v22  ;;  %v140_v57 = vld [vmem:[#allocation3 + $0x358] sm:$0xff]  ;;  %v414_v59 = vpack.c.bf16 %v135_v53, %v133_v51  ;;  %v352_v60 = vpack.c.bf16 %v76_v55, %v74_v54  ;;  %v73_v61 = vld [vmem:[#allocation3 + $0x140] sm:$0xff]  ;;  %v75_v62 = vld [vmem:[#allocation3 + $0x150] sm:$0xff] }
  0x2f   :  { %341 = vmatprep.subr.bf16.mxu1 %v340_v24  ;;  %v137_v63 = vld [vmem:[#allocation3 + $0x340] sm:$0xff]  ;;  %v416_v0 = vpack.c.bf16 %v140_v57, %v138_v56  ;;  %v139_v1 = vld [vmem:[#allocation3 + $0x350] sm:$0xff]  ;;  %v78_v2 = vld [vmem:[#allocation3 + $0x168] sm:$0xff]  ;;  %v354_v6 = vpack.c.bf16 %v75_v62, %v73_v61 }
  0x30   :  { %403 = vmatpush1.bf16.msra.mxu0 %v402_v23  ;;  %v80_v3 = vld [vmem:[#allocation3 + $0x178] sm:$0xff]  ;;  %v142_v4 = vld [vmem:[#allocation3 + $0x368] sm:$0xff]  ;;  %v77_v7 = vld [vmem:[#allocation3 + $0x160] sm:$0xff]  ;;  %v418_v8 = vpack.c.bf16 %v139_v1, %v137_v63 }
  0x31   :  { %405 = vmatprep.subr.bf16.mxu0 %v404_v28  ;;  %v144_v5 = vld [vmem:[#allocation3 + $0x378] sm:$0xff]  ;;  %v356_v9 = vpack.c.bf16 %v80_v3, %v78_v2  ;;  %v79_v10 = vld [vmem:[#allocation3 + $0x170] sm:$0xff]  ;;  %v141_v11 = vld [vmem:[#allocation3 + $0x360] sm:$0xff] }
  0x32   :  { %343 = vmatpush1.bf16.msra.mxu1 %v342_v34  ;;  %v143_v12 = vld [vmem:[#allocation3 + $0x370] sm:$0xff]  ;;  %v420_v13 = vpack.c.bf16 %v144_v5, %v142_v4  ;;  %v82_v14 = vld [vmem:[#allocation3 + $0x188] sm:$0xff]  ;;  %v84_v15 = vld [vmem:[#allocation3 + $0x198] sm:$0xff]  ;;  %v358_v20 = vpack.c.bf16 %v79_v10, %v77_v7  ;;  %v162_v4 = vstv %s529_s2 }
  0x33   :  { %345 = vmatprep.subr.bf16.mxu1 %v344_v36  ;;  %v30_v16 = vld [vmem:[%s527_s0 + $0x8] sm:$0x3f]  ;;  %v148_v18 = vld [vmem:[#allocation3 + $0x398] sm:$0xff]  ;;  %v422_v21 = vpack.c.bf16 %v143_v12, %v141_v11  ;;  %v360_v22 = vpack.c.bf16 %v84_v15, %v82_v14  ;;  %v81_v23 = vld [vmem:[#allocation3 + $0x180] sm:$0xff] }
  0x34   :  { %407 = vmatpush1.bf16.msra.mxu0 %v406_v35  ;;  %v146_v17 = vld [vmem:[#allocation3 + $0x388] sm:$0xff]  ;;  %227 = vmatprep.mubr.f32.mxu1 %v30_v16  ;;  %v32_v19 = vld [vmem:[%s527_s0 + $0x18] sm:$0x3f]  ;;  %v83_v24 = vld [vmem:[#allocation3 + $0x190] sm:$0xff] }
  0x35   :  { %409 = vmatprep.subr.bf16.mxu0 %v408_v40  ;;  %298 = vmatprep.mubr.f32.mxu0 %v32_v19  ;;  %v145_v25 = vld [vmem:[#allocation3 + $0x380] sm:$0xff]  ;;  %v424_v26 = vpack.c.bf16 %v148_v18, %v146_v17  ;;  %v147_v27 = vld [vmem:[#allocation3 + $0x390] sm:$0xff]  ;;  %v86_v28 = vld [vmem:[#allocation3 + $0x1a8] sm:$0xff]  ;;  %v362_v32 = vpack.c.bf16 %v83_v24, %v81_v23 }
  0x36   :  { %347 = vmatpush1.bf16.msra.mxu1 %v346_v46  ;;  %v88_v29 = vld [vmem:[#allocation3 + $0x1b8] sm:$0xff]  ;;  %v150_v30 = vld [vmem:[#allocation3 + $0x3a8] sm:$0xff]  ;;  %v426_v33 = vpack.c.bf16 %v147_v27, %v145_v25  ;;  %v85_v35 = vld [vmem:[#allocation3 + $0x1a0] sm:$0xff] }
  0x37   :  { %349 = vmatprep.subr.bf16.mxu1 %v348_v48  ;;  %v152_v31 = vld [vmem:[#allocation3 + $0x3b8] sm:$0xff]  ;;  %v364_v34 = vpack.c.bf16 %v88_v29, %v86_v28  ;;  %v87_v36 = vld [vmem:[#allocation3 + $0x1b0] sm:$0xff]  ;;  %v149_v37 = vld [vmem:[#allocation3 + $0x3a0] sm:$0xff] }
  0x38   :  { %411 = vmatpush1.bf16.msra.mxu0 %v410_v47  ;;  %v428_v38 = vpack.c.bf16 %v152_v31, %v150_v30  ;;  %v151_v39 = vld [vmem:[#allocation3 + $0x3b0] sm:$0xff]  ;;  %v90_v40 = vld [vmem:[#allocation3 + $0x1c8] sm:$0xff]  ;;  %v92_v41 = vld [vmem:[#allocation3 + $0x1d8] sm:$0xff]  ;;  %v366_v44 = vpack.c.bf16 %v87_v36, %v85_v35 }
  0x39   :  { %413 = vmatprep.subr.bf16.mxu0 %v412_v52  ;;  %v154_v42 = vld [vmem:[#allocation3 + $0x3c8] sm:$0xff]  ;;  %v156_v43 = vld [vmem:[#allocation3 + $0x3d8] sm:$0xff]  ;;  %v430_v45 = vpack.c.bf16 %v151_v39, %v149_v37  ;;  %v368_v46 = vpack.c.bf16 %v92_v41, %v90_v40  ;;  %v89_v47 = vld [vmem:[#allocation3 + $0x1c0] sm:$0xff] }
  0x3a   :  { %351 = vmatpush1.bf16.msra.mxu1 %v350_v58  ;;  %v91_v48 = vld [vmem:[#allocation3 + $0x1d0] sm:$0xff]  ;;  %v153_v49 = vld [vmem:[#allocation3 + $0x3c0] sm:$0xff]  ;;  %v432_v50 = vpack.c.bf16 %v156_v43, %v154_v42  ;;  %v94_v52 = vld [vmem:[#allocation3 + $0x1e8] sm:$0xff] }
  0x3b   :  { %353 = vmatprep.subr.bf16.mxu1 %v352_v60  ;;  %v155_v51 = vld [vmem:[#allocation3 + $0x3d0] sm:$0xff]  ;;  %v96_v53 = vld [vmem:[#allocation3 + $0x1f8] sm:$0xff]  ;;  %v158_v54 = vld [vmem:[#allocation3 + $0x3e8] sm:$0xff]  ;;  %v370_v56 = vpack.c.bf16 %v91_v48, %v89_v47 }
  0x3c   :  { %415 = vmatpush1.bf16.msra.mxu0 %v414_v59  ;;  %v160_v55 = vld [vmem:[#allocation3 + $0x3f8] sm:$0xff]  ;;  %v434_v57 = vpack.c.bf16 %v155_v51, %v153_v49  ;;  %v372_v58 = vpack.c.bf16 %v96_v53, %v94_v52  ;;  %v93_v59 = vld [vmem:[#allocation3 + $0x1e0] sm:$0xff]  ;;  %v95_v60 = vld [vmem:[#allocation3 + $0x1f0] sm:$0xff] }
  0x3d   :  { %417 = vmatprep.subr.bf16.mxu0 %v416_v0  ;;  %v436_v61 = vpack.c.bf16 %v160_v55, %v158_v54  ;;  %v157_v62 = vld [vmem:[#allocation3 + $0x3e0] sm:$0xff]  ;;  %v159_v63 = vld [vmem:[#allocation3 + $0x3f0] sm:$0xff]  ;;  %v374_v0 = vpack.c.bf16 %v95_v60, %v93_v59 }
  0x3e   :  { %355 = vmatpush1.bf16.msra.mxu1 %v354_v6  ;;  %v438_v1 = vpack.c.bf16 %v159_v63, %v157_v62  ;;  %v29_v2 = vld [vmem:[%s527_s0] sm:$0x3f]  ;;  %v31_v3 = vld [vmem:[%s527_s0 + $0x10] sm:$0x3f] }
  0x3f   :  { %357 = vmatprep.subr.bf16.mxu1 %v356_v9 }
  0x40   :  { %419 = vmatpush1.bf16.msra.mxu0 %v418_v8 }
  0x41   :  { %421 = vmatprep.subr.bf16.mxu0 %v420_v13 }
  0x42   :  { %359 = vmatpush1.bf16.msra.mxu1 %v358_v20 }
  0x43   :  { %361 = vmatprep.subr.bf16.mxu1 %v360_v22 }
  0x44   :  { %423 = vmatpush1.bf16.msra.mxu0 %v422_v21 }
  0x45   :  { %425 = vmatprep.subr.bf16.mxu0 %v424_v26 }
  0x46   :  { %363 = vmatpush1.bf16.msra.mxu1 %v362_v32 }
  0x47   :  { %365 = vmatprep.subr.bf16.mxu1 %v364_v34 }
  0x48   :  { %427 = vmatpush1.bf16.msra.mxu0 %v426_v33 }
  0x49   :  { %429 = vmatprep.subr.bf16.mxu0 %v428_v38 }
  0x4a   :  { %367 = vmatpush1.bf16.msra.mxu1 %v366_v44 }
  0x4b   :  { %369 = vmatprep.subr.bf16.mxu1 %v368_v46 }
  0x4c   :  { %431 = vmatpush1.bf16.msra.mxu0 %v430_v45 }
  0x4d   :  { %433 = vmatprep.subr.bf16.mxu0 %v432_v50 }
  0x4e   :  { %371 = vmatpush1.bf16.msra.mxu1 %v370_v56 }
  0x4f   :  { %373 = vmatprep.subr.bf16.mxu1 %v372_v58 }
  0x50   :  { %435 = vmatpush1.bf16.msra.mxu0 %v434_v57 }
  0x51   :  { %437 = vmatprep.subr.bf16.mxu0 %v436_v61 }
  0x52   :  { %375 = vmatpush1.bf16.msra.mxu1 %v374_v0 }
  0x54   :  { %439 = vmatpush1.bf16.msra.mxu0 %v438_v1 }
  0x55   :  { %228 = vmatmul.mubr.f32.vlgmr.msra.gmra.mrb[0].mxu1 %v29_v2 }
  0x57   :  { %299 = vmatmul.mubr.f32.vlgmr.msra.gmra.mrb[0].mxu0 %v31_v3 }
 0x128   :  { %v229_v5 = vpop.f32.mrb[0].mxu1 }
 0x129   :  { %v230_v6 = vadd.f32 %v229_v5, %v162_v4  ;;  %v231_v7 = vpop.f32.mrb[1].mxu1 }
 0x12a   :  { %v300_v8 = vpop.f32.mrb[0].mxu0  ;;  %v232_v9 = vadd.f32 %v231_v7, %v162_v4 }
 0x12b   :  { %v302_v10 = vpop.f32.mrb[1].mxu0  ;;  %v301_v11 = vadd.f32 %v300_v8, %v230_v6 }
 0x12c   :  { %v303_v12 = vadd.f32 %v302_v10, %v232_v9 }
 0x12d   :  { %305 = vst [vmem:[%s530_s3] sm:$0x3f] %v301_v11 }
 0x12e   :  { %306 = vst [vmem:[%s530_s3 + $0x8] sm:$0x3f] %v303_v12 }
 0x12f   :  { %311 = vsyncpa [#allocation4], 1 }

</bundles_post_ra>
